<compile_context>
chip_gen: v6e
topology: v6e:2x2x1
jax: 0.10.0
libtpu: 0.0.40
codegen_flags: <defaults>
</compile_context>

<pallas_src>
import numpy as np

import jax
import jax.numpy as jnp
from jax import lax
from jax.experimental import pallas as pl
from jax.experimental.pallas import tpu as pltpu


def _round_up(v, m):
    return (v + m - 1) // m * m


# -----------------------------------------------------------------------------
# pltpu.roll convention guard.  The conv kernel needs xs[:, p] == x[:, p + s];
# this probe (run once, outside jit) pins down the roll direction so the kernel
# is correct regardless of the convention of the installed jax version.
# -----------------------------------------------------------------------------
_ROLL_LIKE_JNP = True   # updated from __main__ by _probe_roll_direction()


def _probe_roll_direction():
    def kern(x_ref, o_ref):
        o_ref[...] = pltpu.roll(x_ref[...], 1, 1)

    x = jnp.tile(jnp.arange(128, dtype=jnp.float32)[None, :], (8, 1))
    y = pl.pallas_call(
        kern, out_shape=jax.ShapeDtypeStruct((8, 128), jnp.float32))(x)
    return bool(y[0, 0] == 127.0)   # True  ->  pltpu.roll(x, s)[i] == x[i - s]


# -----------------------------------------------------------------------------
# Fused Conv3d (+ Tanh + InstanceNorm3d) Pallas kernel
# -----------------------------------------------------------------------------
def _conv3d_kernel_factory(shifts, l_pad, apply_tanh_norm, valid_count):
    """Builds a fused Conv3d[+Tanh+InstanceNorm3d] kernel for one sample.

    Refs:
      x_ref: (1, C_in_p, L_pad)        bf16  D-padded input, (D,H,W) flattened
      w_ref: (n_taps, C_out_p, C_in_p) bf16  one matrix per kernel tap
      m_ref: (1, L_pad)                f32   validity mask (valid conv outputs)
      o_ref: (1, C_out_p, L_pad)       f32
    """
    inv_count = 1.0 / float(valid_count)
    # xs[:, p] must equal x[:, p + s]; roll direction resolved by the probe.
    roll_amts = [((l_pad - s) if _ROLL_LIKE_JNP else s) % l_pad for s in shifts]

    def kernel(x_ref, w_ref, m_ref, o_ref):
        x = x_ref[0].astype(jnp.float32)               # (C_in_p, L_pad)
        acc = None
        for t, (s, amt) in enumerate(zip(shifts, roll_amts)):
            xs = x if s == 0 else pltpu.roll(x, amt, 1)
            part = jnp.dot(w_ref[t], xs.astype(jnp.bfloat16),
                           preferred_element_type=jnp.float32)
            acc = part if acc is None else acc + part

        if apply_tanh_norm:
            y = jnp.tanh(acc)                          # f32 (v5e: no bf16 EUP)
            m = m_ref[...]                             # (1, L_pad)
            ym = y * m
            s1 = jnp.sum(ym, axis=-1, keepdims=True)      # single pass: sum
            s2 = jnp.sum(ym * y, axis=-1, keepdims=True)  # and sum of squares
            mean = s1 * inv_count
            var = jnp.maximum(s2 * inv_count - mean * mean, 0.0)
            y = (y - mean) * lax.rsqrt(var + 1e-5)     # InstanceNorm3d, no affine
            o_ref[0] = y.astype(o_ref.dtype)
        else:
            o_ref[0] = acc.astype(o_ref.dtype)

    return kernel


def conv3d_pallas(x, weight, *, stride, d_pad=1, apply_tanh_norm=True):
    """Conv3d(kernel, stride, padding=(d_pad, 0, 0), bias=False, groups=1,
    dilation=1), optionally fused with Tanh + InstanceNorm3d (= ConvBlock3D).

    x: (N, C_in, D, H, W) f32, weight: (C_out, C_in, kd, kh, kw) f32.
    """
    n, c_in, d_in, h_in, w_in = x.shape
    c_out, c_in_w, kd, kh, kw = weight.shape
    assert c_in_w == c_in
    sd, sh, sw = stride

    dp = d_in + 2 * d_pad                 # RSP_Head only pads the temporal axis
    d_out = (dp - kd) // sd + 1
    h_out = (h_in - kh) // sh + 1
    w_out = (w_in - kw) // sw + 1

    l_sp = dp * h_in * w_in               # flattened (D, H, W) -> lane axis
    l_pad = _round_up(l_sp, 128)          # lane-dense blocks / stores
    c_in_p = _round_up(c_in, 8)
    c_out_p = _round_up(c_out, 8)
    n_taps = kd * kh * kw

    # Input: zero-pad channels + temporal axis, flatten spatial into lanes,
    # cast to bf16 for the MXU (halves the input DMA bytes).
    xp = jnp.pad(x, ((0, 0), (0, c_in_p - c_in), (d_pad, d_pad), (0, 0), (0, 0)))
    x2 = jnp.pad(xp.reshape(n, c_in_p, l_sp), ((0, 0), (0, 0), (0, l_pad - l_sp)))
    x2 = x2.astype(jnp.bfloat16)

    # Weight: one (C_out_p, C_in_p) matrix per kernel tap (zd-major order).
    wp = jnp.pad(weight, ((0, c_out_p - c_out), (0, c_in_p - c_in),
                          (0, 0), (0, 0), (0, 0)))
    w_taps = jnp.transpose(wp, (2, 3, 4, 0, 1)).reshape(
        n_taps, c_out_p, c_in_p).astype(jnp.bfloat16)

    # Lane shift of tap (zd, zh, zw) inside the flattened (Dp, H, W) axis.
    shifts = [zd * h_in * w_in + zh * w_in + zw
              for zd in range(kd) for zh in range(kh) for zw in range(kw)]

    # Valid output lanes: p = (sd*do)*H*W + (sh*ho)*W + (sw*wo).  Encoding the
    # stride here (instead of strided slicing in-kernel) keeps the kernel a pure
    # roll+matmul pipeline; the wrapper subsamples afterwards, which is
    # mathematically identical to a strided conv.
    md = (np.arange(dp) % sd == 0) & (np.arange(dp) <= (d_out - 1) * sd)
    mh = (np.arange(h_in) % sh == 0) & (np.arange(h_in) <= (h_out - 1) * sh)
    mw = (np.arange(w_in) % sw == 0) & (np.arange(w_in) <= (w_out - 1) * sw)
    mask = (md[:, None, None] & mh[None, :, None] & mw[None, None, :]).reshape(-1)
    mask = np.pad(mask, (0, l_pad - l_sp)).astype(np.float32).reshape(1, l_pad)

    kernel = _conv3d_kernel_factory(shifts, l_pad, apply_tanh_norm,
                                    d_out * h_out * w_out)

    out_full = pl.pallas_call(
        kernel,
        out_shape=jax.ShapeDtypeStruct((n, c_out_p, l_pad), jnp.float32),
        grid=(n,),
        in_specs=[
            pl.BlockSpec((1, c_in_p, l_pad), lambda i: (i, 0, 0)),
            pl.BlockSpec((n_taps, c_out_p, c_in_p), lambda i: (0, 0, 0)),
            pl.BlockSpec((1, l_pad), lambda i: (0, 0)),
        ],
        out_specs=pl.BlockSpec((1, c_out_p, l_pad), lambda i: (i, 0, 0)),
        compiler_params=pltpu.CompilerParams(
            dimension_semantics=("parallel",)),
    )(x2, w_taps, jnp.asarray(mask))

    # Drop channel/lane padding, un-flatten, and apply the conv stride by
    # subsampling the full-resolution tap sums.
    y = out_full[:, :c_out, :l_sp].reshape(n, c_out, dp, h_in, w_in)
    return y[:, :,
             0:(d_out - 1) * sd + 1:sd,
             0:(h_out - 1) * sh + 1:sh,
             0:(w_out - 1) * sw + 1:sw]


# -----------------------------------------------------------------------------
# RSP_Head forward (non-FSAM inference path) composed from the fused kernels
# -----------------------------------------------------------------------------
_BRANCH_STRIDES = ((1, 1, 1), (2, 2, 2), (1, 1, 1), (1, 1, 1))


def rsp_head_forward(rgb_embeddings, thermal_embeddings, params, length=None):
    """RSP_Head.forward.  Returns (rBr, voxel_embeddings); on this path the
    original module additionally returns factorized_embeddings=None and
    appx_error=0."""

    def conv_branch(x, weights):
        # ConvBlock3D x4 (Dropout3d between blocks 3 and 4 is identity at eval).
        # TODO(synk): training-mode Dropout3d (channel dropout) not implemented.
        for w, s in zip(weights, _BRANCH_STRIDES):
            x = conv3d_pallas(x, w, stride=s, apply_tanh_norm=True)
        return x

    rgb = conv_branch(rgb_embeddings, params["rgb"])
    thermal = conv_branch(thermal_embeddings, params["thermal"])
    voxel = jnp.concatenate([rgb, thermal], axis=1)

    # TODO(synk): FSAM (FeaturesFactorizationModule) branch is not part of the
    # provided spec; the use_fsam=False / inference branch is implemented.
    x = conv3d_pallas(voxel, params["final_cb"], stride=(1, 2, 2),
                      apply_tanh_norm=True)
    x = jnp.repeat(x, 4, axis=2)     # nn.Upsample(scale_factor=(4,1,1)), nearest
    x = conv3d_pallas(x, params["final_conv"], stride=(1, 1, 1),
                      apply_tanh_norm=False)
    if length is None:
        length = x.shape[2]          # H, W collapse to 1x1 by construction
    rbr = x.reshape(-1, length)
    return rbr, voxel


# -------------------------- pure-JAX reference --------------------------------
def _conv3d_ref(x, w, stride, d_pad=1):
    # Same MXU input rounding as the kernel (bf16 operands, f32 accumulation).
    return lax.conv_general_dilated(
        x.astype(jnp.bfloat16), w.astype(jnp.bfloat16),
        window_strides=stride,
        padding=[(d_pad, d_pad), (0, 0), (0, 0)],
        dimension_numbers=("NCDHW", "OIDHW", "NCDHW"),
        preferred_element_type=jnp.float32,
        precision=lax.Precision.HIGHEST)


def _conv_block3d_ref(x, w, stride):
    y = jnp.tanh(_conv3d_ref(x, w, stride))
    mean = jnp.mean(y, axis=(2, 3, 4), keepdims=True)
    var = jnp.mean((y - mean) ** 2, axis=(2, 3, 4), keepdims=True)
    return (y - mean) * lax.rsqrt(var + 1e-5)


def rsp_head_validate(rgb_embeddings, thermal_embeddings, params):
    """Runs the same layer sequence as rsp_head_forward, but also computes an
    XLA reference for every conv layer on the SAME (Pallas-produced) inputs and
    returns the per-layer max-abs-errors (tight check, no cross-layer error
    compounding)."""
    diffs = []

    def step(x, w, stride, apply_tanh_norm):
        y = conv3d_pallas(x, w, stride=stride, apply_tanh_norm=apply_tanh_norm)
        y_ref = (_conv_block3d_ref(x, w, stride) if apply_tanh_norm
                 else _conv3d_ref(x, w, stride))
        diffs.append(jnp.max(jnp.abs(y - y_ref)))
        return y

    def branch(x, weights):
        for w, s in zip(weights, _BRANCH_STRIDES):
            x = step(x, w, s, True)
        return x

    rgb = branch(rgb_embeddings, params["rgb"])
    thermal = branch(thermal_embeddings, params["thermal"])
    voxel = jnp.concatenate([rgb, thermal], axis=1)
    x = step(voxel, params["final_cb"], (1, 2, 2), True)
    x = jnp.repeat(x, 4, axis=2)
    x = step(x, params["final_conv"], (1, 1, 1), False)
    rbr = x.reshape(-1, x.shape[2])
    return rbr, voxel, jnp.stack(diffs)


# ----------------------------------- main --------------------------------------
if __name__ == "__main__":
    # Resolve the pltpu.roll direction once, outside jit.
    _ROLL_LIKE_JNP = _probe_roll_direction()

    # Small shapes consistent with RSP_Head: nf_RSP[2]=16 channels, batch 2,
    # 8 frames, 29x29 spatial (so the (3,4,4) head conv collapses H,W to 1x1 and
    # rBr = x.view(-1, length) with length = 4 * ceil(T/2) = 16).
    key = jax.random.PRNGKey(0)
    keys = jax.random.split(key, 12)
    batch, chan = 2, 16
    frames, spatial = 8, 29

    def conv_weight(k, c_out, c_in, ksize):
        fan_in = c_in * ksize[0] * ksize[1] * ksize[2]
        w = jax.random.normal(k, (c_out, c_in) + ksize, dtype=jnp.float32)
        return w / jnp.sqrt(float(fan_in))

    params = {
        "rgb": [conv_weight(keys[i], chan, chan, (3, 3, 3)) for i in range(4)],
        "thermal": [conv_weight(keys[4 + i], chan, chan, (3, 3, 3))
                    for i in range(4)],
        "final_cb": conv_weight(keys[8], chan, 2 * chan, (3, 3, 3)),
        "final_conv": conv_weight(keys[9], 1, chan, (3, 4, 4)),
    }
    rgb = jax.random.normal(keys[10], (batch, chan, frames, spatial, spatial),
                            dtype=jnp.float32)
    thermal = jax.random.normal(keys[11], (batch, chan, frames, spatial, spatial),
                                dtype=jnp.float32)

    # Deliverable forward pass.
    rbr, voxel = jax.block_until_ready(
        jax.jit(rsp_head_forward)(rgb, thermal, params))
    assert rbr.shape == (batch, 16), rbr.shape
    assert voxel.shape == (batch, 32, 4, 9, 9), voxel.shape

    # Correctness: per-layer XLA reference on matched (Pallas-produced) inputs
    # for all 10 conv layers, plus consistency of the composed jitted forward.
    rbr_chk, voxel_chk, layer_err = jax.block_until_ready(
        jax.jit(rsp_head_validate)(rgb, thermal, params))
    max_err = float(jnp.max(layer_err))
    assert max_err < 1e-3, f"per-layer max error {max_err}"
    assert jnp.allclose(rbr, rbr_chk, atol=1e-5, rtol=1e-5)
    assert jnp.allclose(voxel, voxel_chk, atol=1e-5, rtol=1e-5)

    print("KERNEL_OK")
</pallas_src>

<mosaic_0001>
module attributes {stable_mosaic.version = 11 : i64} {
  func.func @kern(%arg0: memref<8x128xf32, #tpu.memory_space<vmem>>, %arg1: memref<8x128xf32, #tpu.memory_space<vmem>>) attributes {dimension_semantics = [], scalar_prefetch = 0 : i64, scratch_operands = 0 : i64, tpu.core_type = #tpu.core_type<tc>} {
    %c0 = arith.constant 0 : index
    %c0_0 = arith.constant 0 : index
    %0 = vector.load %arg0[%c0, %c0_0] : memref<8x128xf32, #tpu.memory_space<vmem>>, vector<8x128xf32>
    %c1_i32 = arith.constant 1 : i32
    %1 = tpu.dynamic_rotate %0 by %c1_i32 dim 1 : vector<8x128xf32>, i32 -> vector<8x128xf32>
    %c0_1 = arith.constant 0 : index
    %c0_2 = arith.constant 0 : index
    %2 = vector.load %arg1[%c0_1, %c0_2] : memref<8x128xf32, #tpu.memory_space<vmem>>, vector<8x128xf32>
    tpu.vector_store %arg1[%c0_1, %c0_2], %1 {strides = array<i32>} : memref<8x128xf32, #tpu.memory_space<vmem>>, vector<8x128xf32>,
    return
  }
}

</mosaic_0001>

<bundles_post_ra>
// kernel: tpu_custom_call.1
= control target key start
LH: loop header
LB: loop body
LE: loop exit
PB: predicated region body
PF: predicated region fallthrough
CT: control target
= control target key end

     0   :  { %6 = vsyncpa [#allocation3], 0  ;;  %s106_s0 = inlined_call_operand.hbm [shape: f32[8,128], index: 0, kind: input, shape index: {}]   ;;  %s107_s1 = inlined_call_operand.hbm [shape: f32[8,128], index: 1, kind: output, shape index: {}]  }
   0x1   :  { %7 = vsyncpa [#allocation4], 0  ;;  %s87_s6 = smov [#allocation2]  }
   0x2   :  { %s14_s7 = sshll.u32 %s87_s6, 4  ;;  %s15_s7 = int_to_ptr.vmem [resolvable:$true] %s14_s7 }
   0x3   :  { %s51_s8 = scalar_lea.vmem %s15_s7, 128  ;;  %p56_p1 = scmp.lt.s32.totalorder %s15_s7, %s15_s7 }
   0x4   :  { %p52_p0 = scmp.ne.s32.totalorder %s15_s7, %s51_s8  ;;  %p57_p2 = scmp.lt.s32.totalorder %s51_s8, %s51_s8 }
   0x6   :  { %p58_p3 = por %p57_p2, %p56_p1 }
   0x8   :  { %p59_p4 = pnand %p58_p3, %p52_p0 }
   0xa   :  { %62 = shalt.err (!%p59_p4)
}
   0xb   :  { %17 = dma.hbm_to_vmem [thread:$0]  %s106_s0, 128, %s15_s7, [#allocation3]  }
   0xc   :  { %83 = dma.done.wait [#allocation3], 128  }
   0xd   :  { %84 = vsyncadd [#allocation3], 4294967168  ;;  %v21_v0 = vld [vmem:[#allocation2] sm:$0xff]  ;;  %s88_s11 = smov 1   ;;  %s89_s12 = smov [#allocation5]  }
   0xe   :  { %22 = vrot.lane.b32.xlu0 %v21_v0, %s88_s11  ;;  %s31_s13 = sshll.u32 %s89_s12, 4  ;;  %s32_s13 = int_to_ptr.vmem [resolvable:$true] %s31_s13 }
   0xf   :  { %s63_s14 = scalar_lea.vmem %s32_s13, 128  ;;  %p68_p6 = scmp.lt.s32.totalorder %s32_s13, %s32_s13 }
  0x10   :  { %p64_p5 = scmp.ne.s32.totalorder %s32_s13, %s63_s14  ;;  %p69_p7 = scmp.lt.s32.totalorder %s63_s14, %s63_s14 }
  0x12   :  { %p70_p8 = por %p69_p7, %p68_p6 }
  0x14   :  { %p71_p9 = pnand %p70_p8, %p64_p5 }
  0x80   :  { %v23_v1 = vpop.permute.xlu0 %22 }
  0x81   :  { %24 = vst [vmem:[#allocation5] sm:$0xff] %v23_v1 }
  0x82   :  { %74 = shalt.err (!%p71_p9)
}
  0x83   :  { %34 = dma.vmem_to_hbm [thread:$0]  %s32_s13, 128, %s107_s1, [#allocation4]  }
  0x84   :  { %85 = dma.done.wait [#allocation4], 128  }
  0x85   :  { %86 = vsyncadd [#allocation4], 4294967168 }
  0x86   :  { %38 = vsyncpa [#allocation3], 1 }
  0x87   :  { %39 = vsyncpa [#allocation4], 1 }

</bundles_post_ra>
